<compile_context>
chip_gen: v6e
topology: v6e:2x2x1
jax: 0.10.0
libtpu: 0.0.40
codegen_flags: <defaults>
</compile_context>

<pallas_src>
import functools

import jax
import jax.numpy as jnp
import numpy as np
from jax import lax
from jax.experimental import pallas as pl
from jax.experimental.pallas import tpu as pltpu


def _round_up(x, m):
    return ((x + m - 1) // m) * m


def btconv_kernel(idx_ref, trees_ref, w_ref, bias_ref, out_ref):
    # idx_ref   : (1, 3, tT)          int32  node index per (tap k, output slot t)
    # trees_ref : (1, Cin_p, N_p)     f32    per-node features (PyTorch NCL layout)
    # w_ref     : (3, Cout_p, Cin_p)  f32    conv weight, tap-major, transposed
    # bias_ref  : (Cout_p, 1)         f32
    # out_ref   : (1, Cout_p, tT)     f32
    trees = trees_ref[0]                  # (Cin_p, N_p)
    idx_t = idx_ref[0]                    # (3, tT)
    c_out_p = out_ref.shape[1]
    n_p = trees.shape[1]
    t_t = idx_t.shape[1]

    iota_n = lax.broadcasted_iota(jnp.int32, (n_p, t_t), 0)

    acc = jnp.zeros((c_out_p, t_t), jnp.float32)
    for k in range(3):  # static unroll over the 3 conv taps
        # Stage 1: fold tap-k conv weights into per-node output features.
        #   v_k[o, n] = sum_c weight[o, c, k] * trees[c, n]      (tiny, K=Cin_p)
        v_k = jnp.dot(w_ref[k], trees, preferred_element_type=jnp.float32)
        # Stage 2: gather via one-hot MXU matmul.
        #   onehot_k[n, t] = (idx[k, t] == n)
        onehot_k = (idx_t[k:k + 1, :] == iota_n).astype(jnp.float32)  # (N_p, tT)
        acc = acc + jnp.dot(v_k, onehot_k, preferred_element_type=jnp.float32)

    out_ref[0] = (acc + bias_ref[...]).astype(out_ref.dtype)


@functools.partial(jax.jit, static_argnames=("t_tile",))
def binary_tree_conv(trees, idxes, weight, bias, *, t_tile=None):
    """trees: (B, C_in, N) f32, idxes: (B, 3*T, 1) int, weight: (C_out, C_in, 3), bias: (C_out,)."""
    B, c_in, n_nodes = trees.shape
    L = idxes.shape[1]
    assert L % 3 == 0
    T = L // 3
    c_out = weight.shape[0]

    # Padded / tiled sizes.
    c_in_p = _round_up(c_in, 8)            # sublane alignment for trees
    c_out_p = _round_up(c_out, 128)        # lane/sublane-dense output channels
    n_p = _round_up(n_nodes, 128)          # lane-dense node axis
    t_p = _round_up(max(T, 1), 128)        # lane-dense output store
    if t_tile is None:
        t_tile = min(t_p, 512)             # bound the (N_p, tT) one-hot intermediates
    t_p = _round_up(t_p, t_tile)
    n_t_tiles = t_p // t_tile

    # Layout glue (pure XLA): zero-pad to aligned shapes; make T the lane dim of idx.
    trees_p = jnp.zeros((B, c_in_p, n_p), jnp.float32)
    trees_p = trees_p.at[:, :c_in, :n_nodes].set(trees.astype(jnp.float32))

    idx_kt = jnp.transpose(idxes[..., 0].astype(jnp.int32).reshape(B, T, 3), (0, 2, 1))
    idx_p = jnp.zeros((B, 3, t_p), jnp.int32).at[:, :, :T].set(idx_kt)

    w_kt = jnp.transpose(weight.astype(jnp.float32), (2, 0, 1))       # (3, Cout, Cin)
    w_p = jnp.zeros((3, c_out_p, c_in_p), jnp.float32)
    w_p = w_p.at[:, :c_out, :c_in].set(w_kt)

    bias_p = jnp.zeros((c_out_p, 1), jnp.float32)
    bias_p = bias_p.at[:c_out, 0].set(bias.astype(jnp.float32))

    # Rough per-step VMEM need: double-buffered blocks + matmul intermediates.
    block_bytes = 4 * (8 * t_tile                         # idx (3 -> 8 sublane pad)
                       + c_in_p * n_p                     # trees
                       + 3 * c_out_p * max(c_in_p, 128)   # weights (lane pad)
                       + c_out_p * 128                    # bias (lane pad)
                       + c_out_p * t_tile)                # output block
    interm_bytes = 4 * (c_out_p * n_p + n_p * t_tile + c_out_p * t_tile)
    vmem_limit = int(min(max(2 * block_bytes + interm_bytes + (4 << 20), 32 << 20),
                         64 << 20))                       # stays within v7x's 64 MiB

    out = pl.pallas_call(
        btconv_kernel,
        out_shape=jax.ShapeDtypeStruct((B, c_out_p, t_p), jnp.float32),
        grid=(B, n_t_tiles),
        in_specs=[
            pl.BlockSpec((1, 3, t_tile), lambda b, j: (b, 0, j)),
            pl.BlockSpec((1, c_in_p, n_p), lambda b, j: (b, 0, 0)),
            pl.BlockSpec((3, c_out_p, c_in_p), lambda b, j: (0, 0, 0)),  # constant -> fetched once
            pl.BlockSpec((c_out_p, 1), lambda b, j: (0, 0)),
        ],
        out_specs=pl.BlockSpec((1, c_out_p, t_tile), lambda b, j: (b, 0, j)),
        compiler_params=pltpu.CompilerParams(
            dimension_semantics=("parallel", "parallel"),
            vmem_limit_bytes=vmem_limit),
    )(idx_p, trees_p, w_p, bias_p)

    # Back to PyTorch result layout: drop padding, prepend the zero vector.
    results = jnp.concatenate(
        [jnp.zeros((B, c_out, 1), jnp.float32), out[:, :c_out, :T]], axis=2)
    return results, idxes


def reference(trees, idxes, weight, bias):
    """Pure-JAX reference matching the PyTorch module."""
    B, c_in, _ = trees.shape
    idx = idxes[..., 0].astype(jnp.int32)                               # (B, L)
    expanded = jnp.take_along_axis(trees, idx[:, None, :], axis=2)      # (B, Cin, L)
    T = idx.shape[1] // 3
    c_out = weight.shape[0]
    exp_r = expanded.reshape(B, c_in, T, 3)
    res = jnp.einsum('bctk,ock->bot', exp_r, weight) + bias[None, :, None]
    zero = jnp.zeros((B, c_out, 1), jnp.float32)
    return jnp.concatenate([zero, res], axis=2)


if __name__ == "__main__":
    B, C_IN, C_OUT, N_NODES, T = 2, 8, 16, 16, 8
    L = 3 * T

    key = jax.random.PRNGKey(0)
    k_trees, k_idx, k_w, k_b = jax.random.split(key, 4)

    trees = jax.random.normal(k_trees, (B, C_IN, N_NODES), dtype=jnp.float32)
    idxes = jax.random.randint(k_idx, (B, L, 1), 0, N_NODES, dtype=jnp.int32)

    # Deterministic Conv1d-style parameter init: U(-1/sqrt(fan_in), 1/sqrt(fan_in))
    fan_in = C_IN * 3
    bound = 1.0 / np.sqrt(fan_in)
    weight = jax.random.uniform(k_w, (C_OUT, C_IN, 3), jnp.float32, -bound, bound)
    bias = jax.random.uniform(k_b, (C_OUT,), jnp.float32, -bound, bound)

    results, out_idxes = binary_tree_conv(trees, idxes, weight, bias)
    results = jax.block_until_ready(results)

    expected = reference(trees, idxes, weight, bias)
    np.testing.assert_allclose(np.asarray(results), np.asarray(expected),
                               rtol=1e-4, atol=1e-4)
    assert results.shape == (B, C_OUT, T + 1)
    assert out_idxes.shape == idxes.shape

    print("KERNEL_OK")
</pallas_src>

<mosaic_0001>
module attributes {stable_mosaic.version = 11 : i64} {
  func.func @btconv_kernel(%arg0: i32, %arg1: i32, %arg2: memref<1x3x128xi32, #tpu.memory_space<vmem>>, %arg3: memref<1x8x128xf32, #tpu.memory_space<vmem>>, %arg4: memref<3x128x8xf32, #tpu.memory_space<vmem>>, %arg5: memref<128x1xf32, #tpu.memory_space<vmem>>, %arg6: memref<1x128x128xf32, #tpu.memory_space<vmem>>) attributes {dimension_semantics = [#tpu.dimension_semantics<parallel>, #tpu.dimension_semantics<parallel>], iteration_bounds = array<i64: 2, 1>, scalar_prefetch = 0 : i64, scratch_operands = 0 : i64, tpu.core_type = #tpu.core_type<tc>, window_params = [{transform_indices = @transform_0, window_bounds = array<i64: 1, 3, 128>}, {transform_indices = @transform_1, window_bounds = array<i64: 1, 8, 128>}, {pipeline_mode = #tpu.pipeline_mode<synchronous>, transform_indices = @transform_2, window_bounds = array<i64: 3, 128, 8>}, {pipeline_mode = #tpu.pipeline_mode<synchronous>, transform_indices = @transform_3, window_bounds = array<i64: 128, 1>}, {transform_indices = @transform_4, window_bounds = array<i64: 1, 128, 128>}]} {
    %c0 = arith.constant 0 : index
    %c0_0 = arith.constant 0 : index
    %c0_1 = arith.constant 0 : index
    %0 = vector.load %arg3[%c0, %c0_0, %c0_1] : memref<1x8x128xf32, #tpu.memory_space<vmem>>, vector<1x8x128xf32>
    %1 = vector.shape_cast %0 : vector<1x8x128xf32> to vector<8x128xf32>
    %c0_2 = arith.constant 0 : index
    %c0_3 = arith.constant 0 : index
    %c0_4 = arith.constant 0 : index
    %2 = vector.load %arg2[%c0_2, %c0_3, %c0_4] : memref<1x3x128xi32, #tpu.memory_space<vmem>>, vector<1x3x128xi32>
    %3 = vector.shape_cast %2 : vector<1x3x128xi32> to vector<3x128xi32>
    %4 = tpu.iota {dimensions = array<i32: 0>} : vector<128x128xi32>
    %cst = arith.constant 0.000000e+00 : f32
    %5 = vector.broadcast %cst : f32 to vector<128x128xf32>
    %c0_5 = arith.constant 0 : index
    %c0_6 = arith.constant 0 : index
    %c0_7 = arith.constant 0 : index
    %6 = vector.load %arg4[%c0_5, %c0_6, %c0_7] : memref<3x128x8xf32, #tpu.memory_space<vmem>>, vector<1x128x8xf32>
    %7 = vector.shape_cast %6 : vector<1x128x8xf32> to vector<128x8xf32>
    %cst_8 = arith.constant dense<0.000000e+00> : vector<128x128xf32>
    %8 = tpu.matmul %7, %1, %cst_8 {dimension_numbers = #tpu.dot_dimension_numbers<[1], [0], [0], [1], [0, 0, 1, 1], [], []>} : vector<128x8xf32>, vector<8x128xf32>, vector<128x128xf32> -> vector<128x128xf32>
    %9 = vector.extract_strided_slice %3 {offsets = [0, 0], sizes = [1, 128], strides = [1, 1]} : vector<3x128xi32> to vector<1x128xi32>
    %10 = vector.broadcast %9 : vector<1x128xi32> to vector<128x128xi32>
    %11 = arith.cmpi eq, %10, %4 : vector<128x128xi32>
    %12 = arith.extui %11 : vector<128x128xi1> to vector<128x128xi32>
    %13 = arith.sitofp %12 : vector<128x128xi32> to vector<128x128xf32>
    %cst_9 = arith.constant dense<0.000000e+00> : vector<128x128xf32>
    %14 = tpu.matmul %8, %13, %cst_9 {dimension_numbers = #tpu.dot_dimension_numbers<[1], [0], [0], [1], [0, 0, 1, 1], [], []>} : vector<128x128xf32>, vector<128x128xf32>, vector<128x128xf32> -> vector<128x128xf32>
    %15 = arith.addf %5, %14 : vector<128x128xf32>
    %c1 = arith.constant 1 : index
    %c0_10 = arith.constant 0 : index
    %c0_11 = arith.constant 0 : index
    %16 = vector.load %arg4[%c1, %c0_10, %c0_11] : memref<3x128x8xf32, #tpu.memory_space<vmem>>, vector<1x128x8xf32>
    %17 = vector.shape_cast %16 : vector<1x128x8xf32> to vector<128x8xf32>
    %cst_12 = arith.constant dense<0.000000e+00> : vector<128x128xf32>
    %18 = tpu.matmul %17, %1, %cst_12 {dimension_numbers = #tpu.dot_dimension_numbers<[1], [0], [0], [1], [0, 0, 1, 1], [], []>} : vector<128x8xf32>, vector<8x128xf32>, vector<128x128xf32> -> vector<128x128xf32>
    %19 = vector.extract_strided_slice %3 {offsets = [1, 0], sizes = [1, 128], strides = [1, 1]} : vector<3x128xi32> to vector<1x128xi32>
    %20 = vector.broadcast %19 : vector<1x128xi32> to vector<128x128xi32>
    %21 = arith.cmpi eq, %20, %4 : vector<128x128xi32>
    %22 = arith.extui %21 : vector<128x128xi1> to vector<128x128xi32>
    %23 = arith.sitofp %22 : vector<128x128xi32> to vector<128x128xf32>
    %cst_13 = arith.constant dense<0.000000e+00> : vector<128x128xf32>
    %24 = tpu.matmul %18, %23, %cst_13 {dimension_numbers = #tpu.dot_dimension_numbers<[1], [0], [0], [1], [0, 0, 1, 1], [], []>} : vector<128x128xf32>, vector<128x128xf32>, vector<128x128xf32> -> vector<128x128xf32>
    %25 = arith.addf %15, %24 : vector<128x128xf32>
    %c2 = arith.constant 2 : index
    %c0_14 = arith.constant 0 : index
    %c0_15 = arith.constant 0 : index
    %26 = vector.load %arg4[%c2, %c0_14, %c0_15] : memref<3x128x8xf32, #tpu.memory_space<vmem>>, vector<1x128x8xf32>
    %27 = vector.shape_cast %26 : vector<1x128x8xf32> to vector<128x8xf32>
    %cst_16 = arith.constant dense<0.000000e+00> : vector<128x128xf32>
    %28 = tpu.matmul %27, %1, %cst_16 {dimension_numbers = #tpu.dot_dimension_numbers<[1], [0], [0], [1], [0, 0, 1, 1], [], []>} : vector<128x8xf32>, vector<8x128xf32>, vector<128x128xf32> -> vector<128x128xf32>
    %29 = vector.extract_strided_slice %3 {offsets = [2, 0], sizes = [1, 128], strides = [1, 1]} : vector<3x128xi32> to vector<1x128xi32>
    %30 = vector.broadcast %29 : vector<1x128xi32> to vector<128x128xi32>
    %31 = arith.cmpi eq, %30, %4 : vector<128x128xi32>
    %32 = arith.extui %31 : vector<128x128xi1> to vector<128x128xi32>
    %33 = arith.sitofp %32 : vector<128x128xi32> to vector<128x128xf32>
    %cst_17 = arith.constant dense<0.000000e+00> : vector<128x128xf32>
    %34 = tpu.matmul %28, %33, %cst_17 {dimension_numbers = #tpu.dot_dimension_numbers<[1], [0], [0], [1], [0, 0, 1, 1], [], []>} : vector<128x128xf32>, vector<128x128xf32>, vector<128x128xf32> -> vector<128x128xf32>
    %35 = arith.addf %25, %34 : vector<128x128xf32>
    %c0_18 = arith.constant 0 : index
    %c0_19 = arith.constant 0 : index
    %36 = vector.load %arg5[%c0_18, %c0_19] : memref<128x1xf32, #tpu.memory_space<vmem>>, vector<128x1xf32>
    %37 = vector.broadcast %36 : vector<128x1xf32> to vector<128x128xf32>
    %38 = arith.addf %35, %37 : vector<128x128xf32>
    %c0_20 = arith.constant 0 : index
    %c0_21 = arith.constant 0 : index
    %c0_22 = arith.constant 0 : index
    %39 = vector.load %arg6[%c0_20, %c0_21, %c0_22] : memref<1x128x128xf32, #tpu.memory_space<vmem>>, vector<1x128x128xf32>
    %40 = vector.shape_cast %39 : vector<1x128x128xf32> to vector<128x128xf32>
    %41 = vector.shape_cast %38 : vector<128x128xf32> to vector<1x128x128xf32>
    tpu.vector_store %arg6[%c0_20, %c0_21, %c0_22], %41 {strides = array<i32>} : memref<1x128x128xf32, #tpu.memory_space<vmem>>, vector<1x128x128xf32>,
    return
  }
  func.func @transform_0(%arg0: i32, %arg1: i32) -> (i32, i32, i32) {
    %c0_i32 = arith.constant 0 : i32
    %c0_i32_0 = arith.constant 0 : i32
    return %arg0, %c0_i32, %arg1 : i32, i32, i32
  }
  func.func @transform_1(%arg0: i32, %arg1: i32) -> (i32, i32, i32) {
    %c0_i32 = arith.constant 0 : i32
    %c0_i32_0 = arith.constant 0 : i32
    %c0_i32_1 = arith.constant 0 : i32
    return %arg0, %c0_i32, %c0_i32_0 : i32, i32, i32
  }
  func.func @transform_2(%arg0: i32, %arg1: i32) -> (i32, i32, i32) {
    %c0_i32 = arith.constant 0 : i32
    %c0_i32_0 = arith.constant 0 : i32
    %c0_i32_1 = arith.constant 0 : i32
    %c0_i32_2 = arith.constant 0 : i32
    return %c0_i32, %c0_i32_0, %c0_i32_1 : i32, i32, i32
  }
  func.func @transform_3(%arg0: i32, %arg1: i32) -> (i32, i32) {
    %c0_i32 = arith.constant 0 : i32
    %c0_i32_0 = arith.constant 0 : i32
    %c0_i32_1 = arith.constant 0 : i32
    return %c0_i32, %c0_i32_0 : i32, i32
  }
  func.func @transform_4(%arg0: i32, %arg1: i32) -> (i32, i32, i32) {
    %c0_i32 = arith.constant 0 : i32
    %c0_i32_0 = arith.constant 0 : i32
    return %arg0, %c0_i32, %arg1 : i32, i32, i32
  }
}

</mosaic_0001>

<bundles_post_ra>
// kernel: squeeze.1
= control target key start
LH: loop header
LB: loop body
LE: loop exit
PB: predicated region body
PF: predicated region fallthrough
CT: control target
= control target key end

     0   :  { %s67_s8 = smov 119   ;;  %vm8_vm0 = vcmask 23552   ;;  %s68_s11 = smov 122   ;;  %s118_s0 = inlined_call_operand.vmem [shape: s32[2,24], index: 0, kind: input, shape index: {}]   ;;  %s119_s1 = inlined_call_operand.vmem [shape: s32[2,8,3], index: 1, kind: output, shape index: {}]  }
   0x1   :  { %v5_v0 = vld [vmem:[%s118_s0] sm:$0x3]  ;;  %s66_s0 = smov 125   ;;  %s69_s12 = smov 116  }
   0x2   :  { %6 = vst [vmem:[#allocation0] sm:$0x3] %v5_v0  ;;  %s70_s13 = smov 113   ;;  %s71_s14 = smov 110  }
   0x3   :  { %s72_s15 = smov 107  }
   0x9   :  { %v10_v1 = vld [vmem:[#allocation0] sm:$0x3]  }
   0xa   :  { %v22_v2 = vld [vmem:[#allocation0] sm:$0x3]   ;;  %11 = vrot.lane.b32.xlu0 %v10_v1, %s66_s0 }
   0xb   :  { %23 = vrot.lane.b32.xlu1 %v22_v2, %s67_s8  ;;  %v16_v3 = vld [vmem:[#allocation0] sm:$0x3]  }
   0xc   :  { %v28_v4 = vld [vmem:[#allocation0] sm:$0x3]  }
   0xd   :  { %v7_v5 = vld [vmem:[#allocation0] sm:$0x3]  }
   0xe   :  { %9 = vst.msk [vmem:[%s119_s1] ss:$8 sm:$0x3] %vm8_vm0, %v7_v5   ;;  %17 = vrot.lane.b32.xlu0 %v16_v3, %s68_s11  ;;  %v34_v6 = vld [vmem:[#allocation0] sm:$0x3]  }
   0xf   :  { %29 = vrot.lane.b32.xlu1 %v28_v4, %s69_s12  ;;  %v40_v7 = vld [vmem:[#allocation0] sm:$0x3]  }
  0x10   :  { %v46_v8 = vld [vmem:[#allocation0] sm:$0x3]  }
  0x12   :  { %35 = vrot.lane.b32.xlu0 %v34_v6, %s70_s13 }
  0x13   :  { %41 = vrot.lane.b32.xlu1 %v40_v7, %s71_s14 }
  0x16   :  { %47 = vrot.lane.b32.xlu0 %v46_v8, %s72_s15 }
  0x7c   :  { %v12_v9 = vpop.permute.xlu0 %11  }
  0x7d   :  { %v24_v10 = vpop.permute.xlu1 %23   ;;  %52 = vst.msk [vmem:[%s119_s1 + $0x1] ss:$8 sm:$0x3] %vm8_vm0, %v12_v9  }
  0x7e   :  { %54 = vst.msk [vmem:[%s119_s1 + $0x3] ss:$8 sm:$0x3] %vm8_vm0, %v24_v10  }
  0x80   :  { %v18_v11 = vpop.permute.xlu0 %17  }
  0x81   :  { %v30_v12 = vpop.permute.xlu1 %29   ;;  %53 = vst.msk [vmem:[%s119_s1 + $0x2] ss:$8 sm:$0x3] %vm8_vm0, %v18_v11  }
  0x82   :  { %55 = vst.msk [vmem:[%s119_s1 + $0x4] ss:$8 sm:$0x3] %vm8_vm0, %v30_v12  }
  0x84   :  { %v36_v13 = vpop.permute.xlu0 %35  }
  0x85   :  { %v42_v14 = vpop.permute.xlu1 %41   ;;  %56 = vst.msk [vmem:[%s119_s1 + $0x5] ss:$8 sm:$0x3] %vm8_vm0, %v36_v13  }
  0x86   :  { %57 = vst.msk [vmem:[%s119_s1 + $0x6] ss:$8 sm:$0x3] %vm8_vm0, %v42_v14  }
  0x88   :  { %v48_v15 = vpop.permute.xlu0 %47  }
  0x89   :  { %58 = vst.msk [vmem:[%s119_s1 + $0x7] ss:$8 sm:$0x3] %vm8_vm0, %v48_v15  }

// kernel: binary_tree_conv.1
= control target key start
LH: loop header
LB: loop body
LE: loop exit
PB: predicated region body
PF: predicated region fallthrough
CT: control target
= control target key end

     0   :  { %s2379_s15 = smov 0   ;;  %s2381_s16 = smov 0   ;;  %s2987_s0 = inlined_call_operand.vmem [shape: s32[2,3,128], index: 0, kind: input, shape index: {}]   ;;  %s2988_s1 = inlined_call_operand.vmem [shape: f32[2,8,128], index: 1, kind: input, shape index: {}]   ;;  %s2989_s2 = inlined_call_operand.vmem [shape: f32[3,128,8], index: 2, kind: input, shape index: {}]   ;;  %s2990_s3 = inlined_call_operand.vmem [shape: f32[128,1], index: 3, kind: input, shape index: {}]   ;;  %s2991_s4 = inlined_call_operand.vmem [shape: f32[2,128,128], index: 4, kind: output, shape index: {}]  }
   0x1   :  { %s2383_s17 = smov 0  }
   0x2 LB: > { %s26_s18 = sadd.s32 1, %s2346_s16  ;;  %p1723_p0 = scmp.ge.s32.totalorder %s2350_s17, 1  ;;  %s2350_s17 = sphi %s2383_s17, %s14_s17   ;;  %s2346_s16 = sphi %s2381_s16, %s2993_s16   ;;  %s2342_s15 = sphi %s2379_s15, %s2992_s15  }
   0x3   : > { %p28_p1 = scmp.ge.s32.totalorder %s26_s18, 2  ;;  %p189_p2 = scmp.lt.s32.totalorder %s2350_s17, 3 }
   0x5   : > { %s2995_s18 = smov (%p28_p1, %s26_s18), 0  ;;  %p190_p3 = pnand %p1723_p0, %p189_p2 }
   0x6   : > { %p224_p4 = scmp.lt.s32.totalorder (!%p190_p3), %s2342_s15, 1 }
   0x7   : > { %193 = sbr.rel (%p190_p3) target bundleno = 671 (0x29f), region = 36 }
   0xc   : > { %v245_v0 = vlaneseq  ;;  %v262_v1 = vld [vmem:[%s2989_s2] sm:$0xff]  ;;  %vm278_vm0 = vcmask 64512   ;;  %s2997_s15 = smov (!%p224_p4, %s2342_s15), 1  ;;  %v263_v6 = vld [vmem:[%s2989_s2 + $0x8] sm:$0xff]  ;;  %v264_v13 = vld [vmem:[%s2989_s2 + $0x10] sm:$0xff]  ;;  %v2352_v20 = vmov 1.0  }
   0xd   : > { %v1760_v2 = vld [vmem:[%s2989_s2 + $0x80] sm:$0xff]  ;;  %2056 = vmatprep.mubr.msk.f32.mxu0 %vm278_vm0, %v262_v1  ;;  %s1724_s23 = sshll.u32 %s2997_s15, 2  ;;  %s1725_s24 = sshll.u32 %s2997_s15, 3  ;;  %v1761_v10 = vld [vmem:[%s2989_s2 + $0x88] sm:$0xff]  ;;  %v1762_v14 = vld [vmem:[%s2989_s2 + $0x90] sm:$0xff] }
   0xe   : > { %2082 = vmatprep.mubr.msk.f32.mxu1 %vm278_vm0, %v1760_v2  ;;  %v2407_v3 = vshrl.u32 %v245_v0, 7  ;;  %s230_s27 = scalar_lea.vmem %s2987_s0, %s1724_s23  ;;  %s234_s30 = scalar_lea.vmem %s2988_s1, %s1725_s24  ;;  %v265_v16 = vld [vmem:[%s2989_s2 + $0x18] sm:$0xff]  ;;  %v266_v18 = vld [vmem:[%s2989_s2 + $0x20] sm:$0xff]  ;;  %v267_v22 = vld [vmem:[%s2989_s2 + $0x28] sm:$0xff] }
   0xf   : > { %v2425_v8 = vld [vmem:[%s234_s30] sm:$0xff]  ;;  %v1763_v17 = vld [vmem:[%s2989_s2 + $0x98] sm:$0xff]  ;;  %v1765_v23 = vld [vmem:[%s2989_s2 + $0xa8] sm:$0xff]  ;;  %s1906_s23 = sshll.u32 %s2997_s15, 7 }
  0x10   : > { %v474_v4 = vsub.s32 0, %v2407_v3  ;;  %v736_v5 = vsub.s32 1, %v2407_v3  ;;  %v2423_v7 = vadd.s32 120, %v2407_v3  ;;  %v2427_v9 = vld [vmem:[%s230_s27] sm:$0x7]  ;;  %2054 = vmatprep.subr.mxu0 %v2425_v8  ;;  %2080 = vmatprep.subr.mxu1 %v2425_v8  ;;  %v2449_v15 = vadd.s32 112, %v2407_v3  ;;  %s2940_s26 = scalar_lea.vmem %s2991_s4, %s1906_s23 }
  0x11   : > { %2055 = vmatpush3.msra.mxu0 %v2425_v8  ;;  %2081 = vmatpush3.msra.mxu1 %v2425_v8  ;;  %v1764_v19 = vld [vmem:[%s2989_s2 + $0xa0] sm:$0xff]  ;;  %v2480_v21 = vadd.s32 104, %v2407_v3  ;;  %v268_v24 = vld [vmem:[%s2989_s2 + $0x30] sm:$0xff]  ;;  %v2507_v26 = vadd.s32 96, %v2407_v3  ;;  %v269_v27 = vld [vmem:[%s2989_s2 + $0x38] sm:$0xff]  ;;  %v2534_v31 = vadd.s32 88, %v2407_v3 }
  0x12   : > { %v2434_v11 = vrot.slane %v2427_v9, %v474_v4  ;;  %v2437_v12 = vrot.slane %v2427_v9, %v736_v5  ;;  %2057 = vmatmul.mubr.msk.f32.vlgmr.msra.gmra.mxu0 %vm278_vm0, %v263_v6  ;;  %2083 = vmatmul.mubr.msk.f32.vlgmr.msra.gmra.mxu1 %vm278_vm0, %v1761_v10  ;;  %v1766_v25 = vld [vmem:[%s2989_s2 + $0xb0] sm:$0xff]  ;;  %v1767_v28 = vld [vmem:[%s2989_s2 + $0xb8] sm:$0xff]  ;;  %v270_v29 = vld [vmem:[%s2989_s2 + $0x40] sm:$0xff]  ;;  %v2561_v36 = vadd.s32 80, %v2407_v3  ;;  %v2588_v41 = vadd.s32 72, %v2407_v3 }
  0x13   : > { %2059 = vmatprep.mubr.msk.f32.mxu0 %vm278_vm0, %v264_v13  ;;  %2085 = vmatprep.mubr.msk.f32.mxu1 %vm278_vm0, %v1762_v14  ;;  %v1768_v30 = vld [vmem:[%s2989_s2 + $0xc0] sm:$0xff]  ;;  %v271_v32 = vld [vmem:[%s2989_s2 + $0x48] sm:$0xff]  ;;  %v272_v34 = vld [vmem:[%s2989_s2 + $0x50] sm:$0xff]  ;;  %v2609_v46 = vadd.s32 64, %v2407_v3  ;;  %v2620_v47 = vadd.s32 56, %v2407_v3  ;;  %v2637_v50 = vadd.s32 48, %v2407_v3 }
  0x14   : > { %vm753_vm1 = vcmp.eq.s32.totalorder %v2437_v12, %v2423_v7  ;;  %vm491_vm2 = vcmp.eq.s32.totalorder %v2434_v11, %v2423_v7  ;;  %vm752_vm3 = vcmp.eq.s32.totalorder %v2437_v12, %v2449_v15  ;;  %vm490_vm4 = vcmp.eq.s32.totalorder %v2434_v11, %v2449_v15  ;;  %v1769_v33 = vld [vmem:[%s2989_s2 + $0xc8] sm:$0xff]  ;;  %v1770_v35 = vld [vmem:[%s2989_s2 + $0xd0] sm:$0xff]  ;;  %v273_v37 = vld [vmem:[%s2989_s2 + $0x58] sm:$0xff] }
  0x15   : > { %2106 = vmatprep.subr.msk.mxu0 %vm753_vm1, %v2352_v20  ;;  %2162 = vmatprep.subr.msk.mxu1 %vm491_vm2, %v2352_v20  ;;  %vm751_vm5 = vcmp.eq.s32.totalorder %v2437_v12, %v2480_v21  ;;  %vm489_vm6 = vcmp.eq.s32.totalorder %v2434_v11, %v2480_v21  ;;  %vm750_vm7 = vcmp.eq.s32.totalorder %v2437_v12, %v2507_v26  ;;  %v1771_v38 = vld [vmem:[%s2989_s2 + $0xd8] sm:$0xff]  ;;  %v274_v39 = vld [vmem:[%s2989_s2 + $0x60] sm:$0xff]  ;;  %v275_v42 = vld [vmem:[%s2989_s2 + $0x68] sm:$0xff]  ;;  %v2648_v51 = vadd.s32 40, %v2407_v3 }
  0x16   : > { %2107 = vmatpush3.msk.msra.mxu0 %vm753_vm1, %v2352_v20  ;;  %2163 = vmatpush3.msk.msra.mxu1 %vm491_vm2, %v2352_v20  ;;  %vm488_vm8 = vcmp.eq.s32.totalorder %v2434_v11, %v2507_v26  ;;  %vm749_vm9 = vcmp.eq.s32.totalorder %v2437_v12, %v2534_v31  ;;  %vm487_vm10 = vcmp.eq.s32.totalorder %v2434_v11, %v2534_v31  ;;  %v1772_v40 = vld [vmem:[%s2989_s2 + $0xe0] sm:$0xff]  ;;  %v1773_v43 = vld [vmem:[%s2989_s2 + $0xe8] sm:$0xff]  ;;  %v276_v44 = vld [vmem:[%s2989_s2 + $0x70] sm:$0xff]  ;;  %v2659_v52 = vadd.s32 32, %v2407_v3 }
  0x17   : > { %2060 = vmatmul.mubr.msk.f32.gmra.mxu0 %vm278_vm0, %v265_v16  ;;  %2086 = vmatmul.mubr.msk.f32.gmra.mxu1 %vm278_vm0, %v1763_v17  ;;  %vm748_vm11 = vcmp.eq.s32.totalorder %v2437_v12, %v2561_v36  ;;  %vm486_vm12 = vcmp.eq.s32.totalorder %v2434_v11, %v2561_v36  ;;  %v1774_v45 = vld [vmem:[%s2989_s2 + $0xf0] sm:$0xff]  ;;  %vm747_vm13 = vcmp.eq.s32.totalorder %v2437_v12, %v2588_v41  ;;  %v277_v48 = vld [vmem:[%s2989_s2 + $0x78] sm:$0xff]  ;;  %v2670_v53 = vadd.s32 24, %v2407_v3 }
  0x18   : > { %2062 = vmatprep.mubr.msk.f32.mxu0 %vm278_vm0, %v266_v18  ;;  %2088 = vmatprep.mubr.msk.f32.mxu1 %vm278_vm0, %v1764_v19  ;;  %vm485_vm14 = vcmp.eq.s32.totalorder %v2434_v11, %v2588_v41  ;;  %v1775_v49 = vld [vmem:[%s2989_s2 + $0xf8] sm:$0xff]  ;;  %vm746_vm15 = vcmp.eq.s32.totalorder %v2437_v12, %v2609_v46  ;;  %vm484_vm1 = vcmp.eq.s32.totalorder %v2434_v11, %v2609_v46  ;;  %v2681_v54 = vadd.s32 16, %v2407_v3 }
  0x19   : > { %2108 = vmatprep.subr.msk.mxu0 %vm752_vm3, %v2352_v20  ;;  %2164 = vmatprep.subr.msk.mxu1 %vm490_vm4, %v2352_v20  ;;  %vm745_vm2 = vcmp.eq.s32.totalorder %v2437_v12, %v2620_v47  ;;  %v2692_v55 = vadd.s32 8, %v2407_v3 }
  0x1a   : > { %2109 = vmatpush3.msk.msra.mxu0 %vm752_vm3, %v2352_v20  ;;  %2165 = vmatpush3.msk.msra.mxu1 %vm490_vm4, %v2352_v20  ;;  %vm483_vm3 = vcmp.eq.s32.totalorder %v2434_v11, %v2620_v47  ;;  %vm744_vm4 = vcmp.eq.s32.totalorder %v2437_v12, %v2637_v50 }
  0x1b   : > { %2063 = vmatmul.mubr.msk.f32.gmra.mxu0 %vm278_vm0, %v267_v22  ;;  %2089 = vmatmul.mubr.msk.f32.gmra.mxu1 %vm278_vm0, %v1765_v23 }
  0x1c   : > { %2065 = vmatprep.mubr.msk.f32.mxu0 %vm278_vm0, %v268_v24  ;;  %2091 = vmatprep.mubr.msk.f32.mxu1 %vm278_vm0, %v1766_v25 }
  0x1d   : > { %2110 = vmatprep.subr.msk.mxu0 %vm751_vm5, %v2352_v20  ;;  %2166 = vmatprep.subr.msk.mxu1 %vm489_vm6, %v2352_v20 }
  0x1e   : > { %2111 = vmatpush3.msk.msra.mxu0 %vm751_vm5, %v2352_v20  ;;  %2167 = vmatpush3.msk.msra.mxu1 %vm489_vm6, %v2352_v20  ;;  %vm482_vm5 = vcmp.eq.s32.totalorder %v2434_v11, %v2637_v50  ;;  %vm743_vm6 = vcmp.eq.s32.totalorder %v2437_v12, %v2648_v51 }
  0x1f   : > { %2066 = vmatmul.mubr.msk.f32.gmra.mxu0 %vm278_vm0, %v269_v27  ;;  %2092 = vmatmul.mubr.msk.f32.gmra.mxu1 %vm278_vm0, %v1767_v28 }
  0x20   : > { %2068 = vmatprep.mubr.msk.f32.mxu0 %vm278_vm0, %v270_v29  ;;  %2094 = vmatprep.mubr.msk.f32.mxu1 %vm278_vm0, %v1768_v30 }
  0x21   : > { %2112 = vmatprep.subr.msk.mxu0 %vm750_vm7, %v2352_v20  ;;  %2168 = vmatprep.subr.msk.mxu1 %vm488_vm8, %v2352_v20 }
  0x22   : > { %2113 = vmatpush3.msk.msra.mxu0 %vm750_vm7, %v2352_v20  ;;  %2169 = vmatpush3.msk.msra.mxu1 %vm488_vm8, %v2352_v20  ;;  %vm481_vm7 = vcmp.eq.s32.totalorder %v2434_v11, %v2648_v51  ;;  %vm742_vm8 = vcmp.eq.s32.totalorder %v2437_v12, %v2659_v52 }
  0x23   : > { %2069 = vmatmul.mubr.msk.f32.gmra.mxu0 %vm278_vm0, %v271_v32  ;;  %2095 = vmatmul.mubr.msk.f32.gmra.mxu1 %vm278_vm0, %v1769_v33  ;;  %v1840_v32 = vld [vmem:[%s2989_s2 + $0x100] sm:$0xff]  ;;  %v1841_v33 = vld [vmem:[%s2989_s2 + $0x108] sm:$0xff] }
  0x24   : > { %2071 = vmatprep.mubr.msk.f32.mxu0 %vm278_vm0, %v272_v34  ;;  %2097 = vmatprep.mubr.msk.f32.mxu1 %vm278_vm0, %v1770_v35  ;;  %v1842_v34 = vld [vmem:[%s2989_s2 + $0x110] sm:$0xff]  ;;  %v1843_v35 = vld [vmem:[%s2989_s2 + $0x118] sm:$0xff] }
  0x25   : > { %2114 = vmatprep.subr.msk.mxu0 %vm749_vm9, %v2352_v20  ;;  %2170 = vmatprep.subr.msk.mxu1 %vm487_vm10, %v2352_v20 }
  0x26   : > { %2115 = vmatpush3.msk.msra.mxu0 %vm749_vm9, %v2352_v20  ;;  %2171 = vmatpush3.msk.msra.mxu1 %vm487_vm10, %v2352_v20  ;;  %vm480_vm9 = vcmp.eq.s32.totalorder %v2434_v11, %v2659_v52  ;;  %vm741_vm10 = vcmp.eq.s32.totalorder %v2437_v12, %v2670_v53 }
  0x27   : > { %2072 = vmatmul.mubr.msk.f32.gmra.mxu0 %vm278_vm0, %v273_v37  ;;  %2098 = vmatmul.mubr.msk.f32.gmra.mxu1 %vm278_vm0, %v1771_v38  ;;  %v1844_v37 = vld [vmem:[%s2989_s2 + $0x120] sm:$0xff]  ;;  %v1845_v38 = vld [vmem:[%s2989_s2 + $0x128] sm:$0xff] }
  0x28   : > { %2074 = vmatprep.mubr.msk.f32.mxu0 %vm278_vm0, %v274_v39  ;;  %2100 = vmatprep.mubr.msk.f32.mxu1 %vm278_vm0, %v1772_v40  ;;  %v1846_v39 = vld [vmem:[%s2989_s2 + $0x130] sm:$0xff]  ;;  %v1847_v40 = vld [vmem:[%s2989_s2 + $0x138] sm:$0xff] }
  0x29   : > { %2116 = vmatprep.subr.msk.mxu0 %vm748_vm11, %v2352_v20  ;;  %2172 = vmatprep.subr.msk.mxu1 %vm486_vm12, %v2352_v20 }
  0x2a   : > { %2117 = vmatpush3.msk.msra.mxu0 %vm748_vm11, %v2352_v20  ;;  %2173 = vmatpush3.msk.msra.mxu1 %vm486_vm12, %v2352_v20  ;;  %vm479_vm11 = vcmp.eq.s32.totalorder %v2434_v11, %v2670_v53  ;;  %vm740_vm12 = vcmp.eq.s32.totalorder %v2437_v12, %v2681_v54 }
  0x2b   : > { %2075 = vmatmul.mubr.msk.f32.gmra.mxu0 %vm278_vm0, %v275_v42  ;;  %2101 = vmatmul.mubr.msk.f32.gmra.mxu1 %vm278_vm0, %v1773_v43  ;;  %v1848_v42 = vld [vmem:[%s2989_s2 + $0x140] sm:$0xff]  ;;  %v1849_v43 = vld [vmem:[%s2989_s2 + $0x148] sm:$0xff] }
  0x2c   : > { %2077 = vmatprep.mubr.msk.f32.mxu0 %vm278_vm0, %v276_v44  ;;  %2103 = vmatprep.mubr.msk.f32.mxu1 %vm278_vm0, %v1774_v45  ;;  %v1850_v44 = vld [vmem:[%s2989_s2 + $0x150] sm:$0xff]  ;;  %v1851_v45 = vld [vmem:[%s2989_s2 + $0x158] sm:$0xff] }
  0x2d   : > { %2118 = vmatprep.subr.msk.mxu0 %vm747_vm13, %v2352_v20  ;;  %2174 = vmatprep.subr.msk.mxu1 %vm485_vm14, %v2352_v20 }
  0x2e   : > { %2119 = vmatpush3.msk.msra.mxu0 %vm747_vm13, %v2352_v20  ;;  %2175 = vmatpush3.msk.msra.mxu1 %vm485_vm14, %v2352_v20  ;;  %vm478_vm13 = vcmp.eq.s32.totalorder %v2434_v11, %v2681_v54  ;;  %vm739_vm14 = vcmp.eq.s32.totalorder %v2437_v12, %v2692_v55 }
  0x2f   : > { %2078 = vmatmul.mubr.msk.f32.gmra.mxu0 %vm278_vm0, %v277_v48  ;;  %2104 = vmatmul.mubr.msk.f32.gmra.mxu1 %vm278_vm0, %v1775_v49  ;;  %v1852_v48 = vld [vmem:[%s2989_s2 + $0x160] sm:$0xff]  ;;  %v1853_v49 = vld [vmem:[%s2989_s2 + $0x168] sm:$0xff] }
  0x30   : > { %2120 = vmatprep.subr.msk.mxu0 %vm746_vm15, %v2352_v20  ;;  %2176 = vmatprep.subr.msk.mxu1 %vm484_vm1, %v2352_v20 }
  0x31   : > { %2121 = vmatpush3.msk.msra.mxu0 %vm746_vm15, %v2352_v20  ;;  %2177 = vmatpush3.msk.msra.mxu1 %vm484_vm1, %v2352_v20  ;;  %vm477_vm15 = vcmp.eq.s32.totalorder %v2434_v11, %v2692_v55  ;;  %vm738_vm1 = vcmp.eq.s32.totalorder %v2437_v12, %v2407_v3 }
  0x32   : > { %2122 = vmatprep.subr.msk.mxu0 %vm745_vm2, %v2352_v20  ;;  %2178 = vmatprep.subr.msk.mxu1 %vm483_vm3, %v2352_v20 }
  0x33   : > { %2123 = vmatpush3.msk.msra.mxu0 %vm745_vm2, %v2352_v20  ;;  %2179 = vmatpush3.msk.msra.mxu1 %vm483_vm3, %v2352_v20  ;;  %vm476_vm2 = vcmp.eq.s32.totalorder %v2434_v11, %v2407_v3 }
  0x34   : > { %2124 = vmatprep.subr.msk.mxu0 %vm744_vm4, %v2352_v20  ;;  %2180 = vmatprep.subr.msk.mxu1 %vm482_vm5, %v2352_v20 }
  0x35   : > { %2125 = vmatpush3.msk.msra.mxu0 %vm744_vm4, %v2352_v20  ;;  %2181 = vmatpush3.msk.msra.mxu1 %vm482_vm5, %v2352_v20 }
  0x36   : > { %2126 = vmatprep.subr.msk.mxu0 %vm743_vm6, %v2352_v20  ;;  %2182 = vmatprep.subr.msk.mxu1 %vm481_vm7, %v2352_v20 }
  0x37   : > { %2127 = vmatpush3.msk.msra.mxu0 %vm743_vm6, %v2352_v20  ;;  %2183 = vmatpush3.msk.msra.mxu1 %vm481_vm7, %v2352_v20 }
  0x38   : > { %2128 = vmatprep.subr.msk.mxu0 %vm742_vm8, %v2352_v20  ;;  %2184 = vmatprep.subr.msk.mxu1 %vm480_vm9, %v2352_v20 }
  0x39   : > { %2129 = vmatpush3.msk.msra.mxu0 %vm742_vm8, %v2352_v20  ;;  %2185 = vmatpush3.msk.msra.mxu1 %vm480_vm9, %v2352_v20 }
  0x3a   : > { %2130 = vmatprep.subr.msk.mxu0 %vm741_vm10, %v2352_v20  ;;  %2186 = vmatprep.subr.msk.mxu1 %vm479_vm11, %v2352_v20 }
  0x3b   : > { %2131 = vmatpush3.msk.msra.mxu0 %vm741_vm10, %v2352_v20  ;;  %2187 = vmatpush3.msk.msra.mxu1 %vm479_vm11, %v2352_v20 }
  0x3c   : > { %2132 = vmatprep.subr.msk.mxu0 %vm740_vm12, %v2352_v20  ;;  %2188 = vmatprep.subr.msk.mxu1 %vm478_vm13, %v2352_v20 }
  0x3d   : > { %2133 = vmatpush3.msk.msra.mxu0 %vm740_vm12, %v2352_v20  ;;  %2189 = vmatpush3.msk.msra.mxu1 %vm478_vm13, %v2352_v20 }
  0x3e   : > { %2134 = vmatprep.subr.msk.mxu0 %vm739_vm14, %v2352_v20  ;;  %2190 = vmatprep.subr.msk.mxu1 %vm477_vm15, %v2352_v20 }
  0x3f   : > { %2135 = vmatpush3.msk.msra.mxu0 %vm739_vm14, %v2352_v20  ;;  %2191 = vmatpush3.msk.msra.mxu1 %vm477_vm15, %v2352_v20 }
  0x40   : > { %2136 = vmatprep.subr.msk.mxu0 %vm738_vm1, %v2352_v20  ;;  %2192 = vmatprep.subr.msk.mxu1 %vm476_vm2, %v2352_v20 }
  0x41   : > { %2137 = vmatpush3.msk.msra.mxu0 %vm738_vm1, %v2352_v20  ;;  %2193 = vmatpush3.msk.msra.mxu1 %vm476_vm2, %v2352_v20 }
  0x42   : > { %2218 = vmatprep.subr.mxu0 %v2425_v8 }
  0xd2   : > { %v2058_v56 = vpop.f32.mrf.mxu0  ;;  %v2084_v57 = vpop.f32.mrf.mxu1 }
  0xd4   : > { %v393_v58 = vpop.f32.mrf.mxu0  ;;  %v655_v59 = vpop.f32.mrf.mxu1 }
  0xd5   : > { %2138 = vmatprep.mubr.f32.mxu0 %v655_v59  ;;  %2194 = vmatprep.mubr.f32.mxu1 %v393_v58  ;;  %v1288_v58 = vsub.s32 2, %v2407_v3 }
  0xd6   : > { %2139 = vmatmul.mubr.f32.vlgmr.msra.gmra.mxu0 %v2084_v57  ;;  %2195 = vmatmul.mubr.f32.vlgmr.msra.gmra.mxu1 %v2058_v56  ;;  %v1854_v56 = vld [vmem:[%s2989_s2 + $0x170] sm:$0xff]  ;;  %v1855_v57 = vld [vmem:[%s2989_s2 + $0x178] sm:$0xff] }
  0xd7   : > { %v2061_v60 = vpop.f32.mrf.mxu0  ;;  %v2087_v61 = vpop.f32.mrf.mxu1  ;;  %2219 = vmatpush3.msra.mxu0 %v2425_v8  ;;  %v1289_v59 = vrot.slane %v2427_v9, %v1288_v58  ;;  %v1499_v9 = vld [vmem:[%s2990_s3] sm:$0xff] }
  0xd9   : > { %v403_v62 = vpop.f32.mrf.mxu0  ;;  %v665_v63 = vpop.f32.mrf.mxu1  ;;  %vm1305_vm3 = vcmp.eq.s32.totalorder %v1289_v59, %v2423_v7  ;;  %vm1304_vm4 = vcmp.eq.s32.totalorder %v1289_v59, %v2449_v15  ;;  %vm1303_vm5 = vcmp.eq.s32.totalorder %v1289_v59, %v2480_v21  ;;  %vm1301_vm6 = vcmp.eq.s32.totalorder %v1289_v59, %v2534_v31  ;;  %v1501_v7 = vld [vmem:[%s2990_s3 + $0x10] sm:$0xff]  ;;  %v1504_v21 = vld [vmem:[%s2990_s3 + $0x28] sm:$0xff]  ;;  %v1506_v31 = vld [vmem:[%s2990_s3 + $0x38] sm:$0xff] }
  0xda   : > { %2141 = vmatprep.mubr.f32.mxu0 %v665_v63  ;;  %2197 = vmatprep.mubr.f32.mxu1 %v403_v62  ;;  %vm1300_vm7 = vcmp.eq.s32.totalorder %v1289_v59, %v2561_v36  ;;  %vm1299_vm8 = vcmp.eq.s32.totalorder %v1289_v59, %v2588_v41  ;;  %vm1298_vm9 = vcmp.eq.s32.totalorder %v1289_v59, %v2609_v46  ;;  %v2353_v15 = vmov 0   ;;  %v1505_v36 = vld [vmem:[%s2990_s3 + $0x30] sm:$0xff]  ;;  %v1508_v41 = vld [vmem:[%s2990_s3 + $0x48] sm:$0xff]  ;;  %v1507_v46 = vld [vmem:[%s2990_s3 + $0x40] sm:$0xff] }
  0xdb   : > { %v2064_v0 = vpop.f32.mrf.mxu0  ;;  %v2090_v1 = vpop.f32.mrf.mxu1  ;;  %2142 = vmatmul.mubr.f32.gmra.mxu0 %v2087_v61  ;;  %2198 = vmatmul.mubr.f32.gmra.mxu1 %v2061_v60  ;;  %vm1297_vm10 = vcmp.eq.s32.totalorder %v1289_v59, %v2620_v47  ;;  %vm1296_vm11 = vcmp.eq.s32.totalorder %v1289_v59, %v2637_v50  ;;  %vm1295_vm12 = vcmp.eq.s32.totalorder %v1289_v59, %v2648_v51  ;;  %v1510_v47 = vld [vmem:[%s2990_s3 + $0x58] sm:$0xff]  ;;  %v1509_v50 = vld [vmem:[%s2990_s3 + $0x50] sm:$0xff]  ;;  %v1512_v51 = vld [vmem:[%s2990_s3 + $0x68] sm:$0xff] }
  0xdc   : > { %2244 = vmatprep.subr.msk.mxu1 %vm1305_vm3, %v2352_v20  ;;  %vm1294_vm13 = vcmp.eq.s32.totalorder %v1289_v59, %v2659_v52  ;;  %vm1293_vm14 = vcmp.eq.s32.totalorder %v1289_v59, %v2670_v53  ;;  %vm1292_vm15 = vcmp.eq.s32.totalorder %v1289_v59, %v2681_v54  ;;  %vm1291_vm1 = vcmp.eq.s32.totalorder %v1289_v59, %v2692_v55  ;;  %v1511_v52 = vld [vmem:[%s2990_s3 + $0x60] sm:$0xff]  ;;  %v1514_v53 = vld [vmem:[%s2990_s3 + $0x78] sm:$0xff]  ;;  %v1513_v54 = vld [vmem:[%s2990_s3 + $0x70] sm:$0xff] }
  0xdd   : > { %v413_v2 = vpop.f32.mrf.mxu0  ;;  %v675_v4 = vpop.f32.mrf.mxu1  ;;  %2245 = vmatpush3.msk.msra.mxu1 %vm1305_vm3, %v2352_v20  ;;  %vm1290_vm2 = vcmp.eq.s32.totalorder %v1289_v59, %v2407_v3  ;;  %2327 = vset.pattern.permute.xlu1 %v2353_v15  ;;  %v1502_v3 = vld [vmem:[%s2990_s3 + $0x18] sm:$0xff] }
  0xde   : > { %2144 = vmatprep.mubr.f32.mxu0 %v675_v4  ;;  %2200 = vmatprep.mubr.f32.mxu1 %v413_v2 }
  0xdf   : > { %v2067_v5 = vpop.f32.mrf.mxu0  ;;  %v2093_v6 = vpop.f32.mrf.mxu1  ;;  %2145 = vmatmul.mubr.f32.gmra.mxu0 %v2090_v1  ;;  %2201 = vmatmul.mubr.f32.gmra.mxu1 %v2064_v0 }
  0xe0   : > { %2246 = vmatprep.subr.msk.mxu1 %vm1304_vm4, %v2352_v20  ;;  %2326 = vset.pattern.permute.xlu0 %v2353_v15 }
  0xe1   : > { %v423_v10 = vpop.f32.mrf.mxu0  ;;  %v685_v11 = vpop.f32.mrf.mxu1  ;;  %2247 = vmatpush3.msk.msra.mxu1 %vm1304_vm4, %v2352_v20  ;;  %1527 = vperm.xlu1 %2327, %v1501_v7  }
  0xe2   : > { %2147 = vmatprep.mubr.f32.mxu0 %v685_v11  ;;  %2203 = vmatprep.mubr.f32.mxu1 %v423_v10 }
  0xe3   : > { %v2070_v8 = vpop.f32.mrf.mxu0  ;;  %v2096_v12 = vpop.f32.mrf.mxu1  ;;  %2148 = vmatmul.mubr.f32.gmra.mxu0 %v2093_v6  ;;  %2204 = vmatmul.mubr.f32.gmra.mxu1 %v2067_v5 }
  0xe4   : > { %2248 = vmatprep.subr.msk.mxu1 %vm1303_vm5, %v2352_v20  ;;  %1517 = vperm.xlu0 %2326, %v1499_v9  }
  0xe5   : > { %v433_v13 = vpop.f32.mrf.mxu0  ;;  %v695_v14 = vpop.f32.mrf.mxu1  ;;  %2249 = vmatpush3.msk.msra.mxu1 %vm1303_vm5, %v2352_v20  ;;  %1532 = vperm.xlu1 %2327, %v1502_v3  }
  0xe6   : > { %2150 = vmatprep.mubr.f32.mxu0 %v695_v14  ;;  %2206 = vmatprep.mubr.f32.mxu1 %v433_v13 }
  0xe7   : > { %v2073_v16 = vpop.f32.mrf.mxu0  ;;  %v2099_v17 = vpop.f32.mrf.mxu1  ;;  %2151 = vmatmul.mubr.f32.gmra.mxu0 %v2096_v12  ;;  %2207 = vmatmul.mubr.f32.gmra.mxu1 %v2070_v8 }
  0xe9   : > { %v443_v18 = vpop.f32.mrf.mxu0  ;;  %v705_v19 = vpop.f32.mrf.mxu1  ;;  %1542 = vperm.xlu1 %2327, %v1504_v21  }
  0xea   : > { %2153 = vmatprep.mubr.f32.mxu0 %v705_v19  ;;  %2209 = vmatprep.mubr.f32.mxu1 %v443_v18 }
  0xeb   : > { %v2076_v22 = vpop.f32.mrf.mxu0  ;;  %v2102_v23 = vpop.f32.mrf.mxu1  ;;  %2154 = vmatmul.mubr.f32.gmra.mxu0 %v2099_v17  ;;  %2210 = vmatmul.mubr.f32.gmra.mxu1 %v2073_v16 }
  0xed   : > { %v453_v24 = vpop.f32.mrf.mxu0  ;;  %v715_v25 = vpop.f32.mrf.mxu1  ;;  %1552 = vperm.xlu1 %2327, %v1506_v31  }
  0xee   : > { %2156 = vmatprep.mubr.f32.mxu0 %v715_v25  ;;  %2212 = vmatprep.mubr.f32.mxu1 %v453_v24 }
  0xef   : > { %v2079_v27 = vpop.f32.mrf.mxu0  ;;  %v2105_v28 = vpop.f32.mrf.mxu1  ;;  %2157 = vmatmul.mubr.f32.gmra.mxu0 %v2102_v23  ;;  %2213 = vmatmul.mubr.f32.gmra.mxu1 %v2076_v22 }
  0xf1   : > { %v463_v29 = vpop.f32.mrf.mxu0  ;;  %v725_v30 = vpop.f32.mrf.mxu1  ;;  %1562 = vperm.xlu1 %2327, %v1508_v41  }
  0xf2   : > { %2159 = vmatprep.mubr.f32.mxu0 %v725_v30  ;;  %2215 = vmatprep.mubr.f32.mxu1 %v463_v29 }
  0xf3   : > { %2160 = vmatmul.mubr.f32.gmra.mxu0 %v2105_v28  ;;  %2216 = vmatmul.mubr.f32.gmra.mxu1 %v2079_v27 }
  0xf4   : > { %2220 = vmatprep.mubr.msk.f32.mxu0 %vm278_vm0, %v1840_v32 }
  0xf5   : > { %1572 = vperm.xlu1 %2327, %v1510_v47  }
  0xf7   : > { %2221 = vmatmul.mubr.msk.f32.vlgmr.msra.gmra.mxu0 %vm278_vm0, %v1841_v33 }
  0xf8   : > { %2223 = vmatprep.mubr.msk.f32.mxu0 %vm278_vm0, %v1842_v34 }
  0xf9   : > { %1582 = vperm.xlu1 %2327, %v1512_v51  }
  0xfb   : > { %2224 = vmatmul.mubr.msk.f32.gmra.mxu0 %vm278_vm0, %v1843_v35 }
  0xfc   : > { %2226 = vmatprep.mubr.msk.f32.mxu0 %vm278_vm0, %v1844_v37 }
  0xfd   : > { %1592 = vperm.xlu1 %2327, %v1514_v53  }
  0xff   : > { %2227 = vmatmul.mubr.msk.f32.gmra.mxu0 %vm278_vm0, %v1845_v38 }
 0x100   : > { %2229 = vmatprep.mubr.msk.f32.mxu0 %vm278_vm0, %v1846_v39 }
 0x103   : > { %2230 = vmatmul.mubr.msk.f32.gmra.mxu0 %vm278_vm0, %v1847_v40 }
 0x104   : > { %2232 = vmatprep.mubr.msk.f32.mxu0 %vm278_vm0, %v1848_v42 }
 0x107   : > { %2233 = vmatmul.mubr.msk.f32.gmra.mxu0 %vm278_vm0, %v1849_v43 }
 0x108   : > { %2235 = vmatprep.mubr.msk.f32.mxu0 %vm278_vm0, %v1850_v44 }
 0x10b   : > { %2236 = vmatmul.mubr.msk.f32.gmra.mxu0 %vm278_vm0, %v1851_v45 }
 0x10c   : > { %2238 = vmatprep.mubr.msk.f32.mxu0 %vm278_vm0, %v1852_v48 }
 0x10f   : > { %2239 = vmatmul.mubr.msk.f32.gmra.mxu0 %vm278_vm0, %v1853_v49 }
 0x110   : > { %2241 = vmatprep.mubr.msk.f32.mxu0 %vm278_vm0, %v1854_v56 }
 0x113   : > { %2242 = vmatmul.mubr.msk.f32.gmra.mxu0 %vm278_vm0, %v1855_v57  ;;  %vm1302_vm0 = vcmp.eq.s32.totalorder %v1289_v59, %v2507_v26  ;;  %v1503_v26 = vld [vmem:[%s2990_s3 + $0x20] sm:$0xff] }
 0x114   : > { %2250 = vmatprep.subr.msk.mxu1 %vm1302_vm0, %v2352_v20 }
 0x115   : > { %2251 = vmatpush3.msk.msra.mxu1 %vm1302_vm0, %v2352_v20 }
 0x116   : > { %2252 = vmatprep.subr.msk.mxu1 %vm1301_vm6, %v2352_v20 }
 0x117   : > { %2253 = vmatpush3.msk.msra.mxu1 %vm1301_vm6, %v2352_v20 }
 0x118   : > { %2254 = vmatprep.subr.msk.mxu1 %vm1300_vm7, %v2352_v20 }
 0x119   : > { %2255 = vmatpush3.msk.msra.mxu1 %vm1300_vm7, %v2352_v20 }
 0x11a   : > { %2256 = vmatprep.subr.msk.mxu1 %vm1299_vm8, %v2352_v20 }
 0x11b   : > { %2257 = vmatpush3.msk.msra.mxu1 %vm1299_vm8, %v2352_v20 }
 0x11c   : > { %2258 = vmatprep.subr.msk.mxu1 %vm1298_vm9, %v2352_v20 }
 0x11d   : > { %2259 = vmatpush3.msk.msra.mxu1 %vm1298_vm9, %v2352_v20 }
 0x11e   : > { %2260 = vmatprep.subr.msk.mxu1 %vm1297_vm10, %v2352_v20 }
 0x11f   : > { %2261 = vmatpush3.msk.msra.mxu1 %vm1297_vm10, %v2352_v20 }
 0x120   : > { %2262 = vmatprep.subr.msk.mxu1 %vm1296_vm11, %v2352_v20 }
 0x121   : > { %2263 = vmatpush3.msk.msra.mxu1 %vm1296_vm11, %v2352_v20 }
 0x122   : > { %2264 = vmatprep.subr.msk.mxu1 %vm1295_vm12, %v2352_v20 }
 0x123   : > { %2265 = vmatpush3.msk.msra.mxu1 %vm1295_vm12, %v2352_v20 }
 0x124   : > { %2266 = vmatprep.subr.msk.mxu1 %vm1294_vm13, %v2352_v20 }
 0x125   : > { %2267 = vmatpush3.msk.msra.mxu1 %vm1294_vm13, %v2352_v20 }
 0x126   : > { %2268 = vmatprep.subr.msk.mxu1 %vm1293_vm14, %v2352_v20 }
 0x127   : > { %2269 = vmatpush3.msk.msra.mxu1 %vm1293_vm14, %v2352_v20 }
 0x128   : > { %2270 = vmatprep.subr.msk.mxu1 %vm1292_vm15, %v2352_v20 }
 0x129   : > { %2271 = vmatpush3.msk.msra.mxu1 %vm1292_vm15, %v2352_v20 }
 0x12a   : > { %2272 = vmatprep.subr.msk.mxu1 %vm1291_vm1, %v2352_v20 }
 0x12b   : > { %2273 = vmatpush3.msk.msra.mxu1 %vm1291_vm1, %v2352_v20 }
 0x12c   : > { %2274 = vmatprep.subr.msk.mxu1 %vm1290_vm2, %v2352_v20 }
 0x12d   : > { %2275 = vmatpush3.msk.msra.mxu1 %vm1290_vm2, %v2352_v20  ;;  %v1500_v20 = vld [vmem:[%s2990_s3 + $0x8] sm:$0xff] }
 0x12e   : > { %1522 = vperm.xlu0 %2326, %v1500_v20  }
 0x132   : > { %1537 = vperm.xlu0 %2326, %v1503_v26  }
 0x136   : > { %1547 = vperm.xlu0 %2326, %v1505_v36  }
 0x13a   : > { %1557 = vperm.xlu0 %2326, %v1507_v46  }
 0x13e   : > { %1567 = vperm.xlu0 %2326, %v1509_v50  }
 0x142   : > { %1577 = vperm.xlu0 %2326, %v1511_v52  }
 0x146   : > { %1587 = vperm.xlu0 %2326, %v1513_v54  }
 0x15c   : > { %v1528_v58 = vpop.permute.xlu1 %1527 }
 0x15f   : > { %v1518_v7 = vpop.permute.xlu0 %1517 }
 0x160   : > { %v1533_v15 = vpop.permute.xlu1 %1532 }
 0x164   : > { %v1543_v26 = vpop.permute.xlu1 %1542 }
 0x196   : > { %v2890_v55 = vpop.f32.mrf.mxu0  ;;  %v2196_v35 = vpop.f32.mrf.mxu1 }
 0x197   : > { %v1003_v21 = vadd.f32 %v2196_v35, %v2890_v55 }
 0x198   : > { %v2892_v60 = vpop.f32.mrf.mxu0  ;;  %v997_v37 = vpop.f32.mrf.mxu1 }
 0x199   : > { %v998_v36 = vadd.f32 %v997_v37, %v2892_v60 }
 0x19b   : > { %v2894_v61 = vpop.f32.mrf.mxu0  ;;  %v2199_v38 = vpop.f32.mrf.mxu1 }
 0x19c   : > { %v1013_v50 = vadd.f32 %v2199_v38, %v2894_v61 }
 0x19d   : > { %v2896_v62 = vpop.f32.mrf.mxu0  ;;  %v1007_v39 = vpop.f32.mrf.mxu1 }
 0x19e   : > { %v1008_v54 = vadd.f32 %v1007_v39, %v2896_v62 }
 0x19f   : > { %v2898_v63 = vpop.f32.mrf.mxu0  ;;  %v2202_v40 = vpop.f32.mrf.mxu1 }
 0x1a1   : > { %v2900_v0 = vpop.f32.mrf.mxu0  ;;  %v1017_v42 = vpop.f32.mrf.mxu1 }
 0x1a3   : > { %v2902_v1 = vpop.f32.mrf.mxu0  ;;  %v2205_v43 = vpop.f32.mrf.mxu1 }
 0x1a5   : > { %v2904_v2 = vpop.f32.mrf.mxu0  ;;  %v1027_v44 = vpop.f32.mrf.mxu1 }
 0x1a7   : > { %v2906_v4 = vpop.f32.mrf.mxu0  ;;  %v2208_v45 = vpop.f32.mrf.mxu1 }
 0x1a8   : > { %v1043_v37 = vadd.f32 %v2208_v45, %v2906_v4 }
 0x1a9   : > { %v2908_v5 = vpop.f32.mrf.mxu0  ;;  %v1037_v48 = vpop.f32.mrf.mxu1 }
 0x1aa   : > { %v1523_v3 = vpop.permute.xlu0 %1522 }
 0x1ab   : > { %v2910_v6 = vpop.f32.mrf.mxu0  ;;  %v2922_v49 = vpop.f32.mrf.mxu1 }
 0x1ad   : > { %v2912_v10 = vpop.f32.mrf.mxu0  ;;  %v2924_v56 = vpop.f32.mrf.mxu1 }
 0x1ae   : > { %v1538_v46 = vpop.permute.xlu0 %1537 }
 0x1af   : > { %v2914_v11 = vpop.f32.mrf.mxu0  ;;  %v2926_v57 = vpop.f32.mrf.mxu1 }
 0x1b1   : > { %v2916_v8 = vpop.f32.mrf.mxu0  ;;  %v2928_v59 = vpop.f32.mrf.mxu1 }
 0x1b3   : > { %v2918_v12 = vpop.f32.mrf.mxu0  ;;  %v2930_v9 = vpop.f32.mrf.mxu1 }
 0x1b5   : > { %v2920_v13 = vpop.f32.mrf.mxu0  ;;  %v2932_v20 = vpop.f32.mrf.mxu1 }
 0x1b7   : > { %v2222_v14 = vpop.f32.mrf.mxu0 }
 0x1b9   : > { %v1207_v16 = vpop.f32.mrf.mxu0 }
 0x1ba   : > { %2276 = vmatprep.mubr.f32.mxu1 %v1207_v16 }
 0x1bb   : > { %v2225_v17 = vpop.f32.mrf.mxu0  ;;  %2277 = vmatmul.mubr.f32.vlgmr.msra.gmra.mxu1 %v2222_v14  ;;  %v1553_v14 = vpop.permute.xlu1 %1552 }
 0x1bd   : > { %v1217_v18 = vpop.f32.mrf.mxu0 }
 0x1be   : > { %2279 = vmatprep.mubr.f32.mxu1 %v1217_v18 }
 0x1bf   : > { %v2228_v19 = vpop.f32.mrf.mxu0  ;;  %2280 = vmatmul.mubr.f32.gmra.mxu1 %v2225_v17  ;;  %v1023_v17 = vadd.f32 %v2202_v40, %v2898_v63  ;;  %v1563_v63 = vpop.permute.xlu1 %1562  ;;  %v1038_v40 = vadd.f32 %v1037_v48, %v2908_v5 }
 0x1c1   : > { %v1227_v22 = vpop.f32.mrf.mxu0 }
 0x1c2   : > { %2282 = vmatprep.mubr.f32.mxu1 %v1227_v22  ;;  %v1548_v22 = vpop.permute.xlu0 %1547 }
 0x1c3   : > { %v2231_v23 = vpop.f32.mrf.mxu0  ;;  %2283 = vmatmul.mubr.f32.gmra.mxu1 %v2228_v19 }
 0x1c5   : > { %v1237_v24 = vpop.f32.mrf.mxu0 }
 0x1c6   : > { %2285 = vmatprep.mubr.f32.mxu1 %v1237_v24 }
 0x1c7   : > { %v2234_v25 = vpop.f32.mrf.mxu0  ;;  %2286 = vmatmul.mubr.f32.gmra.mxu1 %v2231_v23  ;;  %v1018_v23 = vadd.f32 %v1017_v42, %v2900_v0  ;;  %v1558_v0 = vpop.permute.xlu0 %1557 }
 0x1c9   : > { %v1247_v27 = vpop.f32.mrf.mxu0 }
 0x1ca   : > { %2288 = vmatprep.mubr.f32.mxu1 %v1247_v27  ;;  %v1033_v27 = vadd.f32 %v2205_v43, %v2902_v1 }
 0x1cb   : > { %v2237_v28 = vpop.f32.mrf.mxu0  ;;  %2289 = vmatmul.mubr.f32.gmra.mxu1 %v2234_v25  ;;  %v1568_v45 = vpop.permute.xlu0 %1567 }
 0x1cd   : > { %v1257_v29 = vpop.f32.mrf.mxu0 }
 0x1ce   : > { %2291 = vmatprep.mubr.f32.mxu1 %v1257_v29 }
 0x1cf   : > { %v2240_v30 = vpop.f32.mrf.mxu0  ;;  %2292 = vmatmul.mubr.f32.gmra.mxu1 %v2237_v28 }
 0x1d1   : > { %v1267_v32 = vpop.f32.mrf.mxu0 }
 0x1d2   : > { %2294 = vmatprep.mubr.f32.mxu1 %v1267_v32  ;;  %v1028_v32 = vadd.f32 %v1027_v44, %v2904_v2  ;;  %v1573_v2 = vpop.permute.xlu1 %1572 }
 0x1d3   : > { %v2243_v33 = vpop.f32.mrf.mxu0  ;;  %2295 = vmatmul.mubr.f32.gmra.mxu1 %v2240_v30 }
 0x1d5   : > { %v1277_v34 = vpop.f32.mrf.mxu0 }
 0x1d6   : > { %2297 = vmatprep.mubr.f32.mxu1 %v1277_v34 }
 0x1d7   : > { %2298 = vmatmul.mubr.f32.gmra.mxu1 %v2243_v33 }
 0x27b   : > { %v2278_v31 = vpop.f32.mrf.mxu1 }
 0x27c   : > { %v1484_v41 = vadd.f32 %v2278_v31, %v1003_v21 }
 0x27d   : > { %v1404_v47 = vpop.f32.mrf.mxu1 }
 0x27e   : > { %v1596_v51 = vadd.f32 %v1523_v3, %v1484_v41  ;;  %v1483_v52 = vadd.f32 %v1404_v47, %v998_v36  ;;  %v1048_v3 = vadd.f32 %v2924_v56, %v2912_v10  ;;  %v1058_v41 = vadd.f32 %v2928_v59, %v2916_v8 }
 0x27f   : > { %v2281_v53 = vpop.f32.mrf.mxu1 }
 0x280   : > { %1612 = vst [vmem:[%s2940_s26 + $0x8] sm:$0xff] %v1596_v51  ;;  %v1595_v55 = vadd.f32 %v1518_v7, %v1483_v52  ;;  %v1486_v60 = vadd.f32 %v2281_v53, %v1013_v50  ;;  %v1073_v50 = vadd.f32 %v2930_v9, %v2918_v12  ;;  %v1068_v52 = vadd.f32 %v2932_v20, %v2920_v13 }
 0x281   : > { %v1414_v16 = vpop.f32.mrf.mxu1 }
 0x282   : > { %1611 = vst [vmem:[%s2940_s26] sm:$0xff] %v1595_v55  ;;  %v1598_v18 = vadd.f32 %v1533_v15, %v1486_v60  ;;  %v1485_v19 = vadd.f32 %v1414_v16, %v1008_v54 }
 0x283   : > { %v2284_v61 = vpop.f32.mrf.mxu1 }
 0x284   : > { %1614 = vst [vmem:[%s2940_s26 + $0x18] sm:$0xff] %v1598_v18  ;;  %v1597_v24 = vadd.f32 %v1528_v58, %v1485_v19  ;;  %v1488_v62 = vadd.f32 %v2284_v61, %v1023_v17  ;;  %v1053_v58 = vadd.f32 %v2922_v49, %v2910_v6  ;;  %v1583_v49 = vpop.permute.xlu1 %1582 }
 0x285   : > { %v1424_v25 = vpop.f32.mrf.mxu1 }
 0x286   : > { %1613 = vst [vmem:[%s2940_s26 + $0x10] sm:$0xff] %v1597_v24  ;;  %v1600_v28 = vadd.f32 %v1543_v26, %v1488_v62  ;;  %v1487_v29 = vadd.f32 %v1424_v25, %v1018_v23  ;;  %v1063_v26 = vadd.f32 %v2926_v57, %v2914_v11 }
 0x287   : > { %v2287_v30 = vpop.f32.mrf.mxu1 }
 0x288   : > { %1616 = vst [vmem:[%s2940_s26 + $0x28] sm:$0xff] %v1600_v28  ;;  %v1599_v33 = vadd.f32 %v1538_v46, %v1487_v29  ;;  %v1490_v34 = vadd.f32 %v2287_v30, %v1033_v27  ;;  %v1578_v46 = vpop.permute.xlu0 %1577  ;;  %v1593_v53 = vpop.permute.xlu1 %1592 }
 0x289   : > { %v1434_v35 = vpop.f32.mrf.mxu1 }
 0x28a   : > { %1615 = vst [vmem:[%s2940_s26 + $0x20] sm:$0xff] %v1599_v33  ;;  %v1602_v38 = vadd.f32 %v1553_v14, %v1490_v34  ;;  %v1489_v1 = vadd.f32 %v1434_v35, %v1028_v32 }
 0x28b   : > { %v2290_v39 = vpop.f32.mrf.mxu1 }
 0x28c   : > { %1618 = vst [vmem:[%s2940_s26 + $0x38] sm:$0xff] %v1602_v38  ;;  %v1601_v42 = vadd.f32 %v1548_v22, %v1489_v1  ;;  %v1492_v43 = vadd.f32 %v2290_v39, %v1043_v37  ;;  %v1588_v14 = vpop.permute.xlu0 %1587 }
 0x28d   : > { %v1444_v44 = vpop.f32.mrf.mxu1 }
 0x28e   : > { %1617 = vst [vmem:[%s2940_s26 + $0x30] sm:$0xff] %v1601_v42  ;;  %v1604_v7 = vadd.f32 %v1563_v63, %v1492_v43  ;;  %v1491_v4 = vadd.f32 %v1444_v44, %v1038_v40 }
 0x28f   : > { %v2293_v15 = vpop.f32.mrf.mxu1 }
 0x290   : > { %1620 = vst [vmem:[%s2940_s26 + $0x48] sm:$0xff] %v1604_v7  ;;  %v1603_v5 = vadd.f32 %v1558_v0, %v1491_v4  ;;  %v1494_v48 = vadd.f32 %v2293_v15, %v1053_v58 }
 0x291   : > { %v1454_v21 = vpop.f32.mrf.mxu1 }
 0x292   : > { %1619 = vst [vmem:[%s2940_s26 + $0x40] sm:$0xff] %v1603_v5  ;;  %v1606_v31 = vadd.f32 %v1573_v2, %v1494_v48  ;;  %v1493_v6 = vadd.f32 %v1454_v21, %v1048_v3 }
 0x293   : > { %v2296_v36 = vpop.f32.mrf.mxu1 }
 0x294   : > { %1622 = vst [vmem:[%s2940_s26 + $0x58] sm:$0xff] %v1606_v31  ;;  %v1605_v10 = vadd.f32 %v1568_v45, %v1493_v6  ;;  %v1496_v56 = vadd.f32 %v2296_v36, %v1063_v26 }
 0x295   : > { %v1464_v47 = vpop.f32.mrf.mxu1 }
 0x296   : > { %1621 = vst [vmem:[%s2940_s26 + $0x50] sm:$0xff] %v1605_v10  ;;  %v1608_v11 = vadd.f32 %v1583_v49, %v1496_v56  ;;  %v1495_v57 = vadd.f32 %v1464_v47, %v1058_v41 }
 0x297   : > { %v2299_v51 = vpop.f32.mrf.mxu1 }
 0x298   : > { %1624 = vst [vmem:[%s2940_s26 + $0x68] sm:$0xff] %v1608_v11  ;;  %v1607_v8 = vadd.f32 %v1578_v46, %v1495_v57  ;;  %v1498_v59 = vadd.f32 %v2299_v51, %v1073_v50 }
 0x299   : > { %v1474_v54 = vpop.f32.mrf.mxu1 }
 0x29a   : > { %1623 = vst [vmem:[%s2940_s26 + $0x60] sm:$0xff] %v1607_v8  ;;  %v1610_v55 = vadd.f32 %v1593_v53, %v1498_v59  ;;  %v1497_v60 = vadd.f32 %v1474_v54, %v1068_v52 }
 0x29c   : > { %1626 = vst [vmem:[%s2940_s26 + $0x78] sm:$0xff] %v1610_v55  ;;  %v1609_v16 = vadd.f32 %v1588_v14, %v1497_v60 }
 0x29e   : > { %1625 = vst [vmem:[%s2940_s26 + $0x70] sm:$0xff] %v1609_v16 }
 0x29f PF: > { %s14_s17 = sadd.s32 1, %s2350_s17   ;;  %s2992_s15 = smov %s2346_s16 }
 0x2a0   : > { %p11_p5 = scmp.ge.s32.totalorder %s14_s17, 4   ;;  %s2993_s16 = smov %s2995_s18 }
 0x2a2   :  { %13 = sbr.rel (!%p11_p5) target bundleno = 2 (0x2), region = 71 }

</bundles_post_ra>
